<compile_context>
chip_gen: v7x
topology: tpu7x:2x2x1
jax: 0.10.0
libtpu: 0.0.40
codegen_flags: <defaults>
</compile_context>

<pallas_src>
import functools

import jax
import jax.numpy as jnp
from jax.experimental import pallas as pl
from jax.experimental.pallas import tpu as pltpu


def _three_head_kernel(x_ref, wx_ref, bx_ref, wy_ref, by_ref, wt_ref, bt_ref,
                       ox_ref, oy_ref, ot_ref):
    # x_ref: (TM, H); w*_ref: (H, D*); b*_ref: (1, D*); o*_ref: (TM, D*)
    x = x_ref[...]
    ox_ref[...] = (jnp.dot(x, wx_ref[...], preferred_element_type=jnp.float32)
                   + bx_ref[...]).astype(ox_ref.dtype)
    oy_ref[...] = (jnp.dot(x, wy_ref[...], preferred_element_type=jnp.float32)
                   + by_ref[...]).astype(oy_ref.dtype)
    ot_ref[...] = (jnp.dot(x, wt_ref[...], preferred_element_type=jnp.float32)
                   + bt_ref[...]).astype(ot_ref.dtype)


def _round_up(v, m):
    return ((v + m - 1) // m) * m


@functools.partial(jax.jit, static_argnames=("cls_in_input", "rel_in_input", "tm"))
def sketch_discrete_pooling(hidden_states, wx, bx, wy, by, wt, bt,
                            *, cls_in_input, rel_in_input, tm=1024):
    """hidden_states: (B, S_full, H)
       wx/wy/wt: (Dx/Dy/Dt, H) (PyTorch nn.Linear layout), bx/by/bt: (D*,)
       Returns (x_pred, y_pred, type_pred) matching the PyTorch module."""
    B, S_full, H = hidden_states.shape
    skip = cls_in_input + rel_in_input
    S = S_full - skip
    rows = B * S

    Dx, Dy, Dt = wx.shape[0], wy.shape[0], wt.shape[0]

    # Activations: avoid materialized copies.  When skip == 0 the reshape is a
    # free bitcast; otherwise the slice is fused into the pallas_call operand
    # via allow_input_fusion (no standalone HBM copy of the activations).
    if skip == 0:
        x2d = hidden_states.reshape(rows, H)
    else:
        x2d = hidden_states[:, skip:, :].reshape(rows, H)

    # Tiny parameter relayouts (done once per call, negligible traffic).
    wx_t = wx.T                         # (H, Dx)
    wy_t = wy.T                         # (H, Dy)
    wt_t = wt.T                         # (H, Dt)
    bx2 = bx.reshape(1, Dx)
    by2 = by.reshape(1, Dy)
    bt2 = bt.reshape(1, Dt)

    # Row tile: as large as requested (multiple of 8) to amortize per-step
    # overhead, but capped so the grid has >= 2 steps whenever rows allow, so
    # the "parallel" axis can be split across v7x's two TensorCores.
    tm_eff = min(tm, max(8, _round_up(pl.cdiv(rows, 2), 8)))
    grid = (pl.cdiv(rows, tm_eff),)     # ragged last block: reads clipped, writes masked

    out_shape = (
        jax.ShapeDtypeStruct((rows, Dx), hidden_states.dtype),
        jax.ShapeDtypeStruct((rows, Dy), hidden_states.dtype),
        jax.ShapeDtypeStruct((rows, Dt), hidden_states.dtype),
    )

    ox, oy, ot = pl.pallas_call(
        _three_head_kernel,
        out_shape=out_shape,
        grid_spec=pltpu.PrefetchScalarGridSpec(
            num_scalar_prefetch=0,
            grid=grid,
            in_specs=[
                pl.BlockSpec((tm_eff, H), lambda i: (i, 0)),   # row tile of activations
                pl.BlockSpec((H, Dx), lambda i: (0, 0)),       # resident weights
                pl.BlockSpec((1, Dx), lambda i: (0, 0)),       # resident bias
                pl.BlockSpec((H, Dy), lambda i: (0, 0)),
                pl.BlockSpec((1, Dy), lambda i: (0, 0)),
                pl.BlockSpec((H, Dt), lambda i: (0, 0)),
                pl.BlockSpec((1, Dt), lambda i: (0, 0)),
            ],
            out_specs=[
                pl.BlockSpec((tm_eff, Dx), lambda i: (i, 0)),
                pl.BlockSpec((tm_eff, Dy), lambda i: (i, 0)),
                pl.BlockSpec((tm_eff, Dt), lambda i: (i, 0)),
            ],
        ),
        compiler_params=pltpu.CompilerParams(
            dimension_semantics=("parallel",),                 # row tiles across TCs (v7x)
            vmem_limit_bytes=32 * 1024 * 1024,
            # Let XLA fuse the cls/rel-dropping slice into the activation operand
            # so it is read straight from hidden_states (no extra HBM pass).
            allow_input_fusion=(True, False, False, False, False, False, False),
        ),
    )(x2d, wx_t, bx2, wy_t, by2, wt_t, bt2)

    # Reshapes of contiguous outputs are free bitcasts -- no extra HBM pass.
    return (ox.reshape(B, S, Dx), oy.reshape(B, S, Dy), ot.reshape(B, S, Dt))


if __name__ == "__main__":
    # Module hyperparameters (small, consistent with the forward signature).
    hidden_dim = 32
    max_size = (16, 16)          # -> x/y output dims = 2*16+1 = 33
    type_size = 8
    cls_in_input = 1
    rel_in_input = 0
    batch, seq_len = 2, 8        # hidden_states has seq_len + cls tokens

    Dx = 2 * max_size[0] + 1
    Dy = 2 * max_size[1] + 1
    Dt = type_size

    key = jax.random.PRNGKey(0)
    ks = jax.random.split(key, 7)

    hidden_states = jax.random.normal(
        ks[0], (batch, seq_len + cls_in_input + rel_in_input, hidden_dim),
        dtype=jnp.float32)

    # nn.Linear-style params (weight: (out, in), bias: (out,)).
    lim = 1.0 / jnp.sqrt(hidden_dim)
    wx = jax.random.uniform(ks[1], (Dx, hidden_dim), jnp.float32, -lim, lim)
    bx = jax.random.uniform(ks[2], (Dx,), jnp.float32, -lim, lim)
    wy = jax.random.uniform(ks[3], (Dy, hidden_dim), jnp.float32, -lim, lim)
    by = jax.random.uniform(ks[4], (Dy,), jnp.float32, -lim, lim)
    wt = jax.random.uniform(ks[5], (Dt, hidden_dim), jnp.float32, -lim, lim)
    bt = jax.random.uniform(ks[6], (Dt,), jnp.float32, -lim, lim)

    x_pred, y_pred, type_pred = sketch_discrete_pooling(
        hidden_states, wx, bx, wy, by, wt, bt,
        cls_in_input=cls_in_input, rel_in_input=rel_in_input)
    x_pred, y_pred, type_pred = jax.block_until_ready((x_pred, y_pred, type_pred))

    # Reference (plain JAX == PyTorch forward).
    hs = hidden_states[:, cls_in_input + rel_in_input:, :]
    ref_x = hs @ wx.T + bx
    ref_y = hs @ wy.T + by
    ref_t = hs @ wt.T + bt

    assert x_pred.shape == (batch, seq_len, Dx)
    assert y_pred.shape == (batch, seq_len, Dy)
    assert type_pred.shape == (batch, seq_len, Dt)
    assert jnp.allclose(x_pred, ref_x, atol=1e-5), "x_pred mismatch"
    assert jnp.allclose(y_pred, ref_y, atol=1e-5), "y_pred mismatch"
    assert jnp.allclose(type_pred, ref_t, atol=1e-5), "type_pred mismatch"

    print("KERNEL_OK")
</pallas_src>

<mosaic_0001>
module attributes {stable_mosaic.version = 11 : i64} {
  func.func @_three_head_kernel(%arg0: i32, %arg1: memref<8x32xf32, #tpu.memory_space<vmem>>, %arg2: memref<32x33xf32, #tpu.memory_space<vmem>>, %arg3: memref<1x33xf32, #tpu.memory_space<vmem>>, %arg4: memref<32x33xf32, #tpu.memory_space<vmem>>, %arg5: memref<1x33xf32, #tpu.memory_space<vmem>>, %arg6: memref<32x8xf32, #tpu.memory_space<vmem>>, %arg7: memref<1x8xf32, #tpu.memory_space<vmem>>, %arg8: memref<8x33xf32, #tpu.memory_space<vmem>>, %arg9: memref<8x33xf32, #tpu.memory_space<vmem>>, %arg10: memref<8x8xf32, #tpu.memory_space<vmem>>) attributes {dimension_semantics = [#tpu.dimension_semantics<parallel>], iteration_bounds = array<i64: 2>, scalar_prefetch = 0 : i64, scratch_operands = 0 : i64, tpu.core_type = #tpu.core_type<tc>, window_params = [{transform_indices = @transform_0, window_bounds = array<i64: 8, 32>}, {pipeline_mode = #tpu.pipeline_mode<synchronous>, transform_indices = @transform_1, window_bounds = array<i64: 32, 33>}, {pipeline_mode = #tpu.pipeline_mode<synchronous>, transform_indices = @transform_2, window_bounds = array<i64: 1, 33>}, {pipeline_mode = #tpu.pipeline_mode<synchronous>, transform_indices = @transform_3, window_bounds = array<i64: 32, 33>}, {pipeline_mode = #tpu.pipeline_mode<synchronous>, transform_indices = @transform_4, window_bounds = array<i64: 1, 33>}, {pipeline_mode = #tpu.pipeline_mode<synchronous>, transform_indices = @transform_5, window_bounds = array<i64: 32, 8>}, {pipeline_mode = #tpu.pipeline_mode<synchronous>, transform_indices = @transform_6, window_bounds = array<i64: 1, 8>}, {transform_indices = @transform_7, window_bounds = array<i64: 8, 33>}, {transform_indices = @transform_8, window_bounds = array<i64: 8, 33>}, {transform_indices = @transform_9, window_bounds = array<i64: 8, 8>}]} {
    %c0 = arith.constant 0 : index
    %c0_0 = arith.constant 0 : index
    %0 = vector.load %arg1[%c0, %c0_0] : memref<8x32xf32, #tpu.memory_space<vmem>>, vector<8x32xf32>
    %c0_1 = arith.constant 0 : index
    %c0_2 = arith.constant 0 : index
    %1 = vector.load %arg2[%c0_1, %c0_2] : memref<32x33xf32, #tpu.memory_space<vmem>>, vector<32x33xf32>
    %cst = arith.constant dense<0.000000e+00> : vector<8x33xf32>
    %2 = tpu.matmul %0, %1, %cst {dimension_numbers = #tpu.dot_dimension_numbers<[1], [0], [0], [1], [0, 0, 1, 1], [], []>} : vector<8x32xf32>, vector<32x33xf32>, vector<8x33xf32> -> vector<8x33xf32>
    %c0_3 = arith.constant 0 : index
    %c0_4 = arith.constant 0 : index
    %3 = vector.load %arg3[%c0_3, %c0_4] : memref<1x33xf32, #tpu.memory_space<vmem>>, vector<1x33xf32>
    %4 = vector.broadcast %3 : vector<1x33xf32> to vector<8x33xf32>
    %5 = arith.addf %2, %4 : vector<8x33xf32>
    %c0_5 = arith.constant 0 : index
    %c0_6 = arith.constant 0 : index
    %6 = vector.load %arg8[%c0_5, %c0_6] : memref<8x33xf32, #tpu.memory_space<vmem>>, vector<8x33xf32>
    tpu.vector_store %arg8[%c0_5, %c0_6], %5 {strides = array<i32>} : memref<8x33xf32, #tpu.memory_space<vmem>>, vector<8x33xf32>,
    %c0_7 = arith.constant 0 : index
    %c0_8 = arith.constant 0 : index
    %7 = vector.load %arg4[%c0_7, %c0_8] : memref<32x33xf32, #tpu.memory_space<vmem>>, vector<32x33xf32>
    %cst_9 = arith.constant dense<0.000000e+00> : vector<8x33xf32>
    %8 = tpu.matmul %0, %7, %cst_9 {dimension_numbers = #tpu.dot_dimension_numbers<[1], [0], [0], [1], [0, 0, 1, 1], [], []>} : vector<8x32xf32>, vector<32x33xf32>, vector<8x33xf32> -> vector<8x33xf32>
    %c0_10 = arith.constant 0 : index
    %c0_11 = arith.constant 0 : index
    %9 = vector.load %arg5[%c0_10, %c0_11] : memref<1x33xf32, #tpu.memory_space<vmem>>, vector<1x33xf32>
    %10 = vector.broadcast %9 : vector<1x33xf32> to vector<8x33xf32>
    %11 = arith.addf %8, %10 : vector<8x33xf32>
    %c0_12 = arith.constant 0 : index
    %c0_13 = arith.constant 0 : index
    %12 = vector.load %arg9[%c0_12, %c0_13] : memref<8x33xf32, #tpu.memory_space<vmem>>, vector<8x33xf32>
    tpu.vector_store %arg9[%c0_12, %c0_13], %11 {strides = array<i32>} : memref<8x33xf32, #tpu.memory_space<vmem>>, vector<8x33xf32>,
    %c0_14 = arith.constant 0 : index
    %c0_15 = arith.constant 0 : index
    %13 = vector.load %arg6[%c0_14, %c0_15] : memref<32x8xf32, #tpu.memory_space<vmem>>, vector<32x8xf32>
    %cst_16 = arith.constant dense<0.000000e+00> : vector<8x8xf32>
    %14 = tpu.matmul %0, %13, %cst_16 {dimension_numbers = #tpu.dot_dimension_numbers<[1], [0], [0], [1], [0, 0, 1, 1], [], []>} : vector<8x32xf32>, vector<32x8xf32>, vector<8x8xf32> -> vector<8x8xf32>
    %c0_17 = arith.constant 0 : index
    %c0_18 = arith.constant 0 : index
    %15 = vector.load %arg7[%c0_17, %c0_18] : memref<1x8xf32, #tpu.memory_space<vmem>>, vector<1x8xf32>
    %16 = vector.broadcast %15 : vector<1x8xf32> to vector<8x8xf32>
    %17 = arith.addf %14, %16 : vector<8x8xf32>
    %c0_19 = arith.constant 0 : index
    %c0_20 = arith.constant 0 : index
    %18 = vector.load %arg10[%c0_19, %c0_20] : memref<8x8xf32, #tpu.memory_space<vmem>>, vector<8x8xf32>
    tpu.vector_store %arg10[%c0_19, %c0_20], %17 {strides = array<i32>} : memref<8x8xf32, #tpu.memory_space<vmem>>, vector<8x8xf32>,
    return
  }
  func.func @transform_0(%arg0: i32) -> (i32, i32) {
    %c0_i32 = arith.constant 0 : i32
    %c0_i32_0 = arith.constant 0 : i32
    return %arg0, %c0_i32 : i32, i32
  }
  func.func @transform_1(%arg0: i32) -> (i32, i32) {
    %c0_i32 = arith.constant 0 : i32
    %c0_i32_0 = arith.constant 0 : i32
    %c0_i32_1 = arith.constant 0 : i32
    return %c0_i32, %c0_i32_0 : i32, i32
  }
  func.func @transform_2(%arg0: i32) -> (i32, i32) {
    %c0_i32 = arith.constant 0 : i32
    %c0_i32_0 = arith.constant 0 : i32
    %c0_i32_1 = arith.constant 0 : i32
    return %c0_i32, %c0_i32_0 : i32, i32
  }
  func.func @transform_3(%arg0: i32) -> (i32, i32) {
    %c0_i32 = arith.constant 0 : i32
    %c0_i32_0 = arith.constant 0 : i32
    %c0_i32_1 = arith.constant 0 : i32
    return %c0_i32, %c0_i32_0 : i32, i32
  }
  func.func @transform_4(%arg0: i32) -> (i32, i32) {
    %c0_i32 = arith.constant 0 : i32
    %c0_i32_0 = arith.constant 0 : i32
    %c0_i32_1 = arith.constant 0 : i32
    return %c0_i32, %c0_i32_0 : i32, i32
  }
  func.func @transform_5(%arg0: i32) -> (i32, i32) {
    %c0_i32 = arith.constant 0 : i32
    %c0_i32_0 = arith.constant 0 : i32
    %c0_i32_1 = arith.constant 0 : i32
    return %c0_i32, %c0_i32_0 : i32, i32
  }
  func.func @transform_6(%arg0: i32) -> (i32, i32) {
    %c0_i32 = arith.constant 0 : i32
    %c0_i32_0 = arith.constant 0 : i32
    %c0_i32_1 = arith.constant 0 : i32
    return %c0_i32, %c0_i32_0 : i32, i32
  }
  func.func @transform_7(%arg0: i32) -> (i32, i32) {
    %c0_i32 = arith.constant 0 : i32
    %c0_i32_0 = arith.constant 0 : i32
    return %arg0, %c0_i32 : i32, i32
  }
  func.func @transform_8(%arg0: i32) -> (i32, i32) {
    %c0_i32 = arith.constant 0 : i32
    %c0_i32_0 = arith.constant 0 : i32
    return %arg0, %c0_i32 : i32, i32
  }
  func.func @transform_9(%arg0: i32) -> (i32, i32) {
    %c0_i32 = arith.constant 0 : i32
    %c0_i32_0 = arith.constant 0 : i32
    return %arg0, %c0_i32 : i32, i32
  }
}

</mosaic_0001>

<bundles_post_ra>
// kernel: sketch_discrete_pooling.2
= control target key start
LH: loop header
LB: loop body
LE: loop exit
PB: predicated region body
PF: predicated region fallthrough
CT: control target
= control target key end

     0   :  { %s1311_s0 = inlined_call_operand.vmem [shape: f32[32,33], index: 0, kind: input, shape index: {}]   ;;  %s1312_s1 = inlined_call_operand.vmem [shape: f32[1,33], index: 1, kind: input, shape index: {}]   ;;  %s1313_s2 = inlined_call_operand.vmem [shape: f32[32,33], index: 2, kind: input, shape index: {}]   ;;  %s1314_s3 = inlined_call_operand.vmem [shape: f32[1,33], index: 3, kind: input, shape index: {}]   ;;  %s1315_s4 = inlined_call_operand.vmem [shape: f32[32,8], index: 4, kind: input, shape index: {}]   ;;  %s1316_s5 = inlined_call_operand.vmem [shape: f32[1,8], index: 5, kind: input, shape index: {}]   ;;  %s1317_s6 = inlined_call_operand.vmem [shape: f32[2,8,32], index: 6, kind: input, shape index: {}]   ;;  %s1318_s7 = inlined_call_operand.hbm [shape: f32[16,33], index: 7, kind: output, shape index: {0}]   ;;  %s1319_s8 = inlined_call_operand.hbm [shape: f32[16,33], index: 8, kind: output, shape index: {1}]   ;;  %s1320_s9 = inlined_call_operand.hbm [shape: f32[16,8], index: 9, kind: output, shape index: {2}]  }
   0x1   :  { %1322 = sst [smem:[#allocation10_spill]] %s1311_s0 }
   0x2   :  { %1323 = sst [smem:[#allocation11_spill]] %s1312_s1 }
   0x3   :  { %1324 = sst [smem:[#allocation12_spill]] %s1313_s2 }
   0x4   :  { %1325 = sst [smem:[#allocation13_spill]] %s1314_s3 }
   0x5   :  { %15 = vsyncpa [#allocation3], 0 }
   0x6   :  { %17 = vsyncpa [#allocation3 + $0x1], 0 }
   0x7   :  { %18 = vsyncpa [#allocation5], 0 }
   0x8   :  { %20 = vsyncpa [#allocation5 + $0x1], 0  ;;  %s1092_s30 = smov 0   ;;  %s1094_s10 = smov 0  }
   0x9   :  { %s1096_s11 = smov 0   ;;  %s1098_s12 = smov 0  }
   0xa LB: > { %s1113_s13 = sadd.s32 4294967295, %s1034_s12   ;;  %s1321_s14 = sadd.s32 4294967294, %s1034_s12   ;;  %s1034_s12 = sphi %s1098_s12, %s1337_s12   ;;  %s1030_s11 = sphi %s1096_s11, %s1336_s11   ;;  %s1026_s10 = sphi %s1094_s10, %s1335_s10   ;;  %s1022_s30 = sphi %s1092_s30, %s1334_s30  }
   0xb   : > { %s1117_s15 = sadd.s32 1, %s1034_s12   ;;  %s185_s16 = sadd.s32 1, %s1030_s11 }
   0xc   : > { %s182_s17 = ssub.s32 %s1034_s12, %s1117_s15  ;;  %p195_p0 = scmp.ne.s32.totalorder %s1030_s11, %s1026_s10 }
   0xd   : > { %p183_p1 = scmp.eq.s32.totalorder %s182_s17, 0  ;;  %p196_p2 = scmp.eq.s32.totalorder %s1113_s13, 1 }
   0xe   : > { %p201_p3 = scmp.ne.s32.totalorder %s1026_s10, %s1022_s30  ;;  %p202_p4 = scmp.eq.s32.totalorder %s1321_s14, 1 }
   0xf   : > { %s1130_s18 = scalar_select %p183_p1, %s1030_s11, %s185_s16  }
  0x10   : > { %p1132_p5 = por %p196_p2, %p195_p0  ;;  %p1136_p6 = por %p202_p4, %p201_p3 }
  0x11   : > { %p775_p7 = scmp.ge.s32.totalorder %s1034_s12, 1  ;;  %p297_p8 = scmp.lt.s32.totalorder %s1034_s12, 3 }
  0x13   : > { %p298_p9 = pnand %p775_p7, %p297_p8 }
  0x14   : > { %s1328_s0 = sld [smem:[#allocation10_spill]] (!%p298_p9)  ;;  %v1036_v3 = vmov (!%p298_p9), 0.0|0.0   ;;  %s1329_s2 = sld [smem:[#allocation12_spill]] (!%p298_p9)  ;;  %vm1037_vm0 = vmmov (!%p298_p9), 0   ;;  %v1038_v8 = vmov (!%p298_p9), 0.0   ;;  %v519_v13 = vld [vmem:[%s1315_s4] sm:$0xff] (!%p298_p9) }
  0x15   : > { %301 = sbr.rel (%p298_p9) target bundleno = 313 (0x139), region = 48  ;;  %842 = vmatprep.subr.bf16.mxu0 (!%p298_p9), %v1036_v3  ;;  %848 = vmatprep.subr.bf16.mxu1 (!%p298_p9), %v1036_v3  ;;  %p342_p10 = scmp.lt.s32.totalorder (!%p298_p9), %s1113_s13, 1  ;;  %v520_v14 = vld [vmem:[%s1315_s4 + $0x8] sm:$0xff] (!%p298_p9)  ;;  %vm361_vm1 = vcmask (!%p298_p9), 261120   ;;  %v521_v18 = vld [vmem:[%s1315_s4 + $0x10] sm:$0xff] (!%p298_p9)  ;;  %v522_v19 = vld [vmem:[%s1315_s4 + $0x18] sm:$0xff] (!%p298_p9) }
  0x16   : > { %817 = vmatprep.mubr.msk.f32.mxu0 (!%p298_p9), %vm1037_vm0, %v1038_v8  ;;  %828 = vmatprep.mubr.msk.f32.mxu1 (!%p298_p9), %vm1037_vm0, %v1038_v8  ;;  %v855_v17 = vpack.c.bf16 (!%p298_p9), %v520_v14, %v519_v13  ;;  %v858_v20 = vpack.c.bf16 (!%p298_p9), %v522_v19, %v521_v18  ;;  %s325_s28 = sand.u32 (!%p298_p9), 1, %s1026_s10   ;;  %s1330_s1 = sld [smem:[#allocation11_spill]] (!%p298_p9)  ;;  %vm435_vm2 = vcmask (!%p298_p9), 269312  }
  0x17   : > { %s1187_s29 = sshll.u32 (!%p298_p9), %s325_s28, 3  ;;  %s1194_s22 = sshll.u32 (!%p298_p9), %s1113_s13, 7 }
  0x18   : > { %s1331_s3 = sld [smem:[#allocation13_spill]] (!%p298_p9)  ;;  %s1205_s16 = scalar_lea.hbm (!%p298_p9), %s1318_s7, %s1194_s22 }
  0x19   : > { %s1039_s21 = smov (!%p298_p9), [#allocation2]  }
  0x1a   : > { %v350_v0 = vld [vmem:[%s1328_s0] sm:$0xff] (!%p298_p9)  ;;  %v351_v1 = vld [vmem:[%s1328_s0 + $0x8] sm:$0xff] (!%p298_p9)  ;;  %v352_v2 = vld [vmem:[%s1328_s0 + $0x10] sm:$0xff] (!%p298_p9) }
  0x1b   : > { %v843_v4 = vpack.c.bf16 (!%p298_p9), %v351_v1, %v350_v0  ;;  %v353_v5 = vld [vmem:[%s1328_s0 + $0x18] sm:$0xff] (!%p298_p9)  ;;  %v437_v6 = vld [vmem:[%s1329_s2] sm:$0xff] (!%p298_p9)  ;;  %v438_v7 = vld [vmem:[%s1329_s2 + $0x8] sm:$0xff] (!%p298_p9)  ;;  %s1213_s0 = scalar_lea.hbm (!%p298_p9), %s1319_s8, %s1194_s22 }
  0x1c   : > { %v849_v9 = vpack.c.bf16 %v438_v7, %v437_v6  ;;  %v439_v10 = vld [vmem:[%s1329_s2 + $0x10] sm:$0xff]  ;;  %v846_v11 = vpack.c.bf16 %v353_v5, %v352_v2  ;;  %s343_s24 = scalar_select %p342_p10, %s1113_s13, 1  ;;  %v440_v12 = vld [vmem:[%s1329_s2 + $0x18] sm:$0xff]  ;;  %v780_v21 = vld [vmem:[%s1330_s1] ss:$0 sm:$0xff] }
  0x1d   : > { %844 = vmatpush3.bf16.msra.mxu0 %v843_v4  ;;  %v852_v15 = vpack.c.bf16 %v440_v12, %v439_v10  ;;  %s603_s1 = scalar_lea.sflag [#allocation3], %s325_s28  ;;  %s916_s2 = sshll.u32 %s1039_s21, 4  ;;  %s917_s2 = int_to_ptr.vmem [resolvable:$false] %s916_s2 }
  0x1e   : > { %845 = vmatprep.subr.bf16.mxu0 %v1036_v3  ;;  %850 = vmatpush3.bf16.msra.mxu1 %v849_v9  ;;  %s779_s17 = sshll.u32 %s343_s24, 3  ;;  %v782_v22 = vld [vmem:[%s1331_s3] ss:$0 sm:$0xff]  ;;  %s334_s24 = scalar_lea.vmem [#allocation4], %s1187_s29 }
  0x1f   : > { %851 = vmatprep.subr.bf16.mxu1 %v1036_v3  ;;  %s345_s23 = scalar_lea.vmem %s1317_s6, %s779_s17  ;;  %s639_s14 = sshll.u32 %s334_s24, 4  ;;  %s1215_s14 = int_to_ptr.vmem [resolvable:$true] %s639_s14 }
  0x20   : > { %v346_v16 = vld [vmem:[%s345_s23] sm:$0xff]  ;;  %s327_s23 = scalar_lea.vmem [#allocation2], %s1187_s29  ;;  %s918_s3 = scalar_lea.vmem %s917_s2, 256 }
  0x21   : > { %847 = vmatpush3.bf16.msra.mxu0 %v846_v11  ;;  %s626_s25 = sshll.u32 %s327_s23, 4  ;;  %s1207_s25 = int_to_ptr.vmem [resolvable:$true] %s626_s25 }
  0x22   : > { %854 = vmatprep.subr.bf16.mxu0 %v1036_v3  ;;  %853 = vmatpush3.bf16.msra.mxu1 %v852_v15  ;;  %s912_s17 = scalar_lea.vmem %s1207_s25, 128  ;;  %p919_p0 = scmp.lt.s32.totalorder %s1207_s25, %s917_s2 }
  0x23   : > { %p913_p11 = scmp.ne.s32.totalorder %s1207_s25, %s912_s17  ;;  %p920_p1 = scmp.lt.s32.totalorder %s918_s3, %s912_s17 }
  0x24   : > { %818 = vmatmul.mubr.msk.f32.vlgmr.msra.gmra.mrb[0].mxu0 %vm361_vm1, %v346_v16 }
  0x25   : > { %856 = vmatpush3.bf16.msra.mxu0 %v855_v17  ;;  %829 = vmatmul.mubr.msk.f32.vlgmr.msra.gmra.mrb[0].mxu1 %vm361_vm1, %v346_v16  ;;  %p914_p12 = pnand %p913_p11, %p1132_p5  ;;  %p921_p2 = por %p920_p1, %p919_p0 }
  0x26   : > { %857 = vmatprep.subr.bf16.mxu0 %v1036_v3  ;;  %839 = vmatprep.mubr.msk.f32.mxu0 %vm1037_vm0, %v1038_v8 }
  0x27   : > { %p915_p13 = pneg %p914_p12 }
  0x29   : > { %859 = vmatpush3.bf16.msra.mxu0 %v858_v20  ;;  %p922_p3 = pnand %p921_p2, %p915_p13 }
  0x2c   : > { %840 = vmatmul.mubr.msk.f32.vlgmr.msra.gmra.mrb[2].mxu0 %vm361_vm1, %v346_v16 }
  0xf7   : > { %v431_v23 = vpop.f32.mrb[0].mxu0 }
  0xf8   : > { %v432_v24 = vadd.f32 %v780_v21, %v431_v23  ;;  %v819_v25 = vpop.f32.mrb[1].mxu0  ;;  %v514_v26 = vpop.f32.mrb[0].mxu1 }
  0xf9   : > { %v515_v27 = vadd.f32 %v782_v22, %v514_v26  ;;  %v830_v28 = vpop.f32.mrb[1].mxu1 }
  0xfa   : > { %436 = vst.msk [vmem:[%s327_s23] sm:$0xff] %vm435_vm2, %v432_v24 }
  0xfb   : > { %518 = vst.msk [vmem:[%s334_s24] sm:$0xff] %vm435_vm2, %v515_v27 }
  0xfc   : > { %925 = shalt.err (!%p922_p3)
}
  0xfd   : > { %s926_s28 = scalar_lea.hbm %s1205_s16, 128  ;;  %s930_s26 = scalar_lea.hbm %s1318_s7, 256 }
  0xfe   : > { %p927_p4 = scmp.ne.s32.totalorder %s1205_s16, %s926_s28  ;;  %p931_p9 = scmp.lt.u32.totalorder %s1205_s16, %s1318_s7 }
  0xff   : > { %p932_p10 = scmp.lt.u32.totalorder %s930_s26, %s926_s28  ;;  %p934_p12 = scmp.lt.u32.totalorder %s926_s28, %s1205_s16 }
 0x100   : > { %p928_p7 = pnand %p927_p4, %p1132_p5 }
 0x101   : > { %p933_p11 = por %p932_p10, %p931_p9 }
 0x102   : > { %p929_p8 = pneg %p928_p7 }
 0x103   : > { %p935_p13 = por %p934_p12, %p933_p11 }
 0x105   : > { %p936_p0 = pnand %p935_p13, %p929_p8 }
 0x107   : > { %939 = shalt.err (!%p936_p0)
}
 0x108   : > { %860 = dma.vmem_to_hbm [thread:$0]  (%p1132_p5), %s1207_s25, 128, %s1205_s16, %s603_s1  }
 0x109   : > { %s1332_s3 = sand.u32 1, %s1113_s13   ;;  %s940_s21 = scalar_lea.vmem %s1215_s14, 128 }
 0x10a   : > { %s1240_s17 = scalar_lea.sflag [#allocation5], %s1332_s3  ;;  %p941_p1 = scmp.ne.s32.totalorder %s1215_s14, %s940_s21 }
 0x10b   : > { %s1040_s28 = smov [#allocation4]  }
 0x10c   : > { %p942_p2 = pnand %p941_p1, %p1132_p5  ;;  %s944_s23 = sshll.u32 %s1040_s28, 4  ;;  %s945_s23 = int_to_ptr.vmem [resolvable:$false] %s944_s23 }
 0x10d   : > { %s946_s24 = scalar_lea.vmem %s945_s23, 256  ;;  %p947_p4 = scmp.lt.s32.totalorder %s1215_s14, %s945_s23 }
 0x10e   : > { %p943_p3 = pneg %p942_p2  ;;  %p948_p7 = scmp.lt.s32.totalorder %s946_s24, %s940_s21 }
 0x110   : > { %p949_p8 = por %p948_p7, %p947_p4 }
 0x112   : > { %p950_p9 = pnand %p949_p8, %p943_p3 }
 0x114   : > { %953 = shalt.err (!%p950_p9)
}
 0x115   : > { %s954_s1 = scalar_lea.hbm %s1213_s0, 128  ;;  %s958_s25 = scalar_lea.hbm %s1319_s8, 256 }
 0x116   : > { %p955_p10 = scmp.ne.s32.totalorder %s1213_s0, %s954_s1  ;;  %p959_p13 = scmp.lt.u32.totalorder %s1213_s0, %s1319_s8 }
 0x117   : > { %p960_p0 = scmp.lt.u32.totalorder %s958_s25, %s954_s1  ;;  %p962_p2 = scmp.lt.u32.totalorder %s954_s1, %s1213_s0 }
 0x118   : > { %p956_p11 = pnand %p955_p10, %p1132_p5 }
 0x119   : > { %p961_p1 = por %p960_p0, %p959_p13 }
 0x11a   : > { %p957_p12 = pneg %p956_p11 }
 0x11b   : > { %p963_p3 = por %p962_p2, %p961_p1 }
 0x11d   : > { %p964_p4 = pnand %p963_p3, %p957_p12 }
 0x11f   : > { %967 = shalt.err (!%p964_p4)
}
 0x120   : > { %861 = dma.vmem_to_hbm [thread:$0]  (%p1132_p5), %s1215_s14, 128, %s1213_s0, %s1240_s17   ;;  %v784_v29 = vld [vmem:[%s1316_s5] ss:$0 sm:$0xff]  ;;  %v596_v30 = vpop.f32.mrb[2].mxu0  ;;  %vm600_vm3 = vcmask 64512  }
 0x121   : > { %s341_s21 = scalar_lea.vmem [#allocation6], %s1187_s29  ;;  %v597_v31 = vadd.f32 %v784_v29, %v596_v30  ;;  %v841_v32 = vpop.f32.mrb[3].mxu0  ;;  %s1272_s1 = scalar_lea.hbm %s1320_s9, %s1194_s22 }
 0x122   : > { %s652_s28 = sshll.u32 %s341_s21, 4  ;;  %s1041_s0 = smov [#allocation6]   ;;  %s653_s28 = int_to_ptr.vmem [resolvable:$true] %s652_s28 }
 0x123   : > { %601 = vst.msk [vmem:[%s341_s21] sm:$0xff] %vm600_vm3, %v597_v31  ;;  %s968_s13 = scalar_lea.vmem %s653_s28, 128  ;;  %s972_s14 = sshll.u32 %s1041_s0, 4  ;;  %s973_s14 = int_to_ptr.vmem [resolvable:$false] %s972_s14 }
 0x124   : > { %p969_p7 = scmp.ne.s32.totalorder %s653_s28, %s968_s13  ;;  %s974_s29 = scalar_lea.vmem %s973_s14, 256 }
 0x125   : > { %p975_p10 = scmp.lt.s32.totalorder %s653_s28, %s973_s14  ;;  %p976_p11 = scmp.lt.s32.totalorder %s974_s29, %s968_s13 }
 0x126   : > { %p970_p8 = pnand %p969_p7, %p1132_p5 }
 0x127   : > { %p977_p12 = por %p976_p11, %p975_p10 }
 0x128   : > { %p971_p9 = pneg %p970_p8 }
 0x12a   : > { %p978_p13 = pnand %p977_p12, %p971_p9 }
 0x12c   : > { %981 = shalt.err (!%p978_p13)
}
 0x12d   : > { %s982_s22 = scalar_lea.hbm %s1272_s1, 128  ;;  %s986_s26 = scalar_lea.hbm %s1320_s9, 256 }
 0x12e   : > { %p983_p0 = scmp.ne.s32.totalorder %s1272_s1, %s982_s22  ;;  %p987_p3 = scmp.lt.u32.totalorder %s1272_s1, %s1320_s9 }
 0x12f   : > { %p988_p4 = scmp.lt.u32.totalorder %s986_s26, %s982_s22  ;;  %p990_p8 = scmp.lt.u32.totalorder %s982_s22, %s1272_s1 }
 0x130   : > { %p984_p1 = pnand %p983_p0, %p1132_p5 }
 0x131   : > { %p989_p7 = por %p988_p4, %p987_p3 }
 0x132   : > { %p985_p2 = pneg %p984_p1 }
 0x133   : > { %p991_p9 = por %p990_p8, %p989_p7 }
 0x135   : > { %p992_p10 = pnand %p991_p9, %p985_p2 }
 0x137   : > { %995 = shalt.err (!%p992_p10)
}
 0x138   : > { %862 = dma.vmem_to_hbm [thread:$0]  (%p1132_p5), %s653_s28, 128, %s1272_s1, %s1240_s17  }
 0x139 PF: > { %p876_p11 = scmp.ge.s32.totalorder %s1034_s12, 2  ;;  %s664_s3 = sand.u32 1, %s1022_s30  }
 0x13a   : > { %s665_s21 = scalar_lea.sflag [#allocation3], %s664_s3 }
 0x13b   : > { %p867_p12 = pnand %p876_p11, %p1136_p6 }
 0x13d   : > { %1013 = dma.done.wait (!%p867_p12), %s665_s21, 128  }
 0x13e   : > { %1015 = vsyncadd (!%p867_p12), %s665_s21, 4294967168  ;;  %s1333_s23 = sadd.s32 4294967294, %s1034_s12  }
 0x13f   : > { %s673_s24 = sand.u32 1, %s1333_s23  }
 0x140   : > { %s674_s13 = scalar_lea.sflag [#allocation5], %s673_s24 }
 0x141   : > { %1017 = dma.done.wait (!%p867_p12), %s674_s13, 256  }
 0x142   : > { %1019 = vsyncadd (!%p867_p12), %s674_s13, 4294967040  ;;  %p23_p5 = scmp.ge.s32.totalorder %s1117_s15, 4   ;;  %s1334_s30 = smov %s1026_s10 }
 0x143   : > { %s1335_s10 = smov %s1030_s11  ;;  %s1336_s11 = smov %s1130_s18 }
 0x144   : > { %s1337_s12 = smov %s1117_s15  ;;  %25 = sbr.rel (!%p23_p5) target bundleno = 10 (0xa), region = 115 }
 0x14b   :  { %688 = vsyncpa [#allocation3], 1 }
 0x14c   :  { %690 = vsyncpa [#allocation3 + $0x1], 1 }
 0x14d   :  { %691 = vsyncpa [#allocation5], 1 }
 0x14e   :  { %693 = vsyncpa [#allocation5 + $0x1], 1 }

</bundles_post_ra>
